<compile_context>
chip_gen: v7x
topology: tpu7x:2x2x1
jax: 0.10.0
libtpu: 0.0.40
codegen_flags: <defaults>
</compile_context>

<pallas_src>
import functools
import math

import jax
import jax.numpy as jnp
from jax.experimental import pallas as pl
from jax.experimental.pallas import tpu as pltpu

EPS = 1e-5
_MIN_VMEM = 32 * 1024 * 1024   # v5e default scoped VMEM limit is only 16 MiB
_MAX_VMEM = 48 * 1024 * 1024   # leave headroom inside v7x's 64 MiB physical VMEM


def _vmem_limit(estimate_bytes):
    return int(min(max(_MIN_VMEM, int(1.25 * estimate_bytes)), _MAX_VMEM))


# --------------------------------------------------------------------------------------
# Pass 1: 3x3 "SAME" conv from in-kernel shifted taps (no im2col in HBM) + fused
# per-image BatchNorm partial sums.  One grid step = one batch image.
# --------------------------------------------------------------------------------------
def make_conv_stats_kernel(h, w, mm_dtype):
    hw = h * w

    def kernel(x_ref, w_ref, m_ref, y_ref, stats_ref):
        """x_ref    : (1, Cin, H*W)   raw input image, flattened spatial (lane = H*W)
           w_ref    : (9, Cout, Cin)  conv taps, tap-major (t = kh*3 + kw)   [resident]
           m_ref    : (9, 1, H*W)     border masks (reproduce zero padding)  [resident]
           y_ref    : (1, Cout, H*W)  conv activation (bf16 when use_bf16), lane-dense
           stats_ref: (1, Cout, 2)    fused BN partials: [:,0]=sum, [:,1]=sum(x^2), f32
        """
        x = x_ref[0].astype(mm_dtype)                          # (Cin, H*W)
        acc = None
        for t in range(9):
            dy, dx = t // 3 - 1, t % 3 - 1
            d = dy * w + dx
            if d == 0:
                tap = x
            else:
                # tap[p] = x[p + d]: a flattened-lane rotation written as two static
                # lane slices + concat; positions that fall outside the image are
                # zeroed by the precomputed border mask (== the conv's zero padding).
                tap = jnp.concatenate([x[:, d:], x[:, :d]], axis=1) * m_ref[t]
            part = jnp.dot(w_ref[t], tap, preferred_element_type=jnp.float32)
            acc = part if acc is None else acc + part          # f32 accumulation

        # BN partial statistics from the f32 accumulator (before any bf16 downcast);
        # the global (whole-batch) reduction + mean/var finalize happen in the wrapper.
        stats_ref[0, :, 0:1] = jnp.sum(acc, axis=1, keepdims=True)
        stats_ref[0, :, 1:2] = jnp.sum(acc * acc, axis=1, keepdims=True)
        y_ref[0] = acc.astype(y_ref.dtype)

    return kernel


# --------------------------------------------------------------------------------------
# Pass 2: BatchNorm affine (precomputed scale/shift) -> ReLU -> separable bilinear
# upsample, batched over a channel block; lane-dense (Hout, c_blk*Wout) store.
# --------------------------------------------------------------------------------------
def make_bn_relu_upsample_kernel(c_blk, h, w, hout, wout, mm_dtype):
    def kernel(y_ref, ss_ref, ah_ref, awt_ref, out_ref):
        """y_ref  : (1, c_blk, H, W)       conv activation block
           ss_ref : (c_blk, 2, 1)          BN affine: [:,0]=scale, [:,1]=shift   (f32)
           ah_ref : (Hout, H)              bilinear H matrix
           awt_ref: (W, Wout)              bilinear W matrix (transposed)
           out_ref: (1, Hout, c_blk*Wout)  lane-dense output slab               (f32)
        """
        y = y_ref[0].astype(jnp.float32)                       # (c_blk, H, W)
        ss = ss_ref[...]
        # One vectorized BN affine + ReLU over the whole block (f32 math: v5e-safe).
        feat = jnp.maximum(y * ss[:, 0:1, :] + ss[:, 1:2, :], 0.0)
        # Batched W-upsample: (c_blk*H, W) @ (W, Wout).
        t = jnp.dot(feat.reshape(c_blk * h, w).astype(mm_dtype), awt_ref[...],
                    preferred_element_type=jnp.float32).astype(mm_dtype)
        # Relayout (c_blk, H, Wout) -> (H, c_blk*Wout): static sublane slices
        # concatenated along the lane axis (copy/XLU work, no tiny matmuls).
        u = jnp.concatenate([t[c * h:(c + 1) * h, :] for c in range(c_blk)], axis=-1)
        # Batched H-upsample: (Hout, H) @ (H, c_blk*Wout) -> lane-dense store.
        out_ref[0] = jnp.dot(ah_ref[...], u, preferred_element_type=jnp.float32)

    return kernel


# --------------------------------------------------------------------------------------
# Glue helpers
# --------------------------------------------------------------------------------------
def bilinear_matrix(in_size: int, scale: float) -> jnp.ndarray:
    """1-D bilinear interpolation matrix (nn.Upsample, align_corners=False)."""
    out_size = int(math.floor(in_size * scale))
    o = jnp.arange(out_size, dtype=jnp.float32)
    src = (o + 0.5) / scale - 0.5
    src = jnp.maximum(src, 0.0)                      # PyTorch clamps negative src to 0
    i0f = jnp.floor(src)
    frac = src - i0f
    i0 = jnp.minimum(i0f.astype(jnp.int32), in_size - 1)
    i1 = jnp.minimum(i0 + 1, in_size - 1)
    a = ((1.0 - frac)[:, None] * jax.nn.one_hot(i0, in_size, dtype=jnp.float32)
         + frac[:, None] * jax.nn.one_hot(i1, in_size, dtype=jnp.float32))
    return a  # (out_size, in_size)


def _pass2_vmem_bytes(c, h, w, hout, wout, act_bytes):
    return (2 * c * h * w * act_bytes           # double-buffered activation input
            + 2 * hout * c * wout * 4           # double-buffered output slab
            + c * h * w * 4                     # f32 BN/ReLU temporary
            + 2 * c * h * wout * act_bytes      # W-upsampled temporaries (t, u)
            + (hout * h + w * wout) * act_bytes)


def _choose_channel_block(cout, h, w, hout, wout, act_bytes, budget_bytes):
    """Largest channel block that keeps pass-2 VMEM within budget and keeps the store
    lane-dense ((c*Wout) % 128 == 0, or the full channel dim)."""
    cands = sorted(
        {c for c in (64, 32, 16, 8, 4, 2, 1)
         if c <= cout and cout % c == 0 and (c == cout or (c * wout) % 128 == 0)}
        | {cout}, reverse=True)
    for c in cands:
        if _pass2_vmem_bytes(c, h, w, hout, wout, act_bytes) <= budget_bytes:
            return c
    return cands[-1]


# --------------------------------------------------------------------------------------
# Public wrapper: NCHW in -> NCHW out (same semantics as the PyTorch module's forward).
# --------------------------------------------------------------------------------------
def upsampling_block(x_nchw, conv_w_oihw, bn_gamma, bn_beta,
                     scale_factor=2.0, use_bf16=True):
    n, cin, h, w = x_nchw.shape
    cout = conv_w_oihw.shape[0]
    hw = h * w
    hout = int(math.floor(h * scale_factor))
    wout = int(math.floor(w * scale_factor))
    mm_dtype = jnp.bfloat16 if use_bf16 else jnp.float32
    act_dtype = mm_dtype                                  # inter-pass activation dtype
    act_bytes = jnp.dtype(act_dtype).itemsize
    mm_bytes = jnp.dtype(mm_dtype).itemsize
    x_bytes = x_nchw.dtype.itemsize

    # ---- pass 1 inputs: raw image (free reshape), packed taps, tiny border masks -----
    x_flat = x_nchw.reshape(n, cin, hw)                   # no pad / no 9x blow-up
    w_taps = jnp.transpose(conv_w_oihw, (2, 3, 0, 1)).reshape(9, cout, cin)
    w_taps = w_taps.astype(mm_dtype)                      # (9, Cout, Cin), t = kh*3+kw

    rows = jnp.arange(h, dtype=jnp.int32).reshape(h, 1)
    cols = jnp.arange(w, dtype=jnp.int32).reshape(1, w)
    masks = []
    for t in range(9):
        dy, dx = t // 3 - 1, t % 3 - 1
        ok = ((rows + dy >= 0) & (rows + dy < h) & (cols + dx >= 0) & (cols + dx < w))
        masks.append(ok.reshape(1, 1, hw))
    tap_masks = jnp.concatenate(masks, axis=0).astype(mm_dtype)    # (9, 1, H*W)

    flops1 = n * (2 * 9 * cin * cout * hw + 9 * cin * hw + 4 * cout * hw)
    bytes1 = (x_flat.size * x_bytes + w_taps.size * mm_bytes + tap_masks.size * mm_bytes
              + n * cout * hw * act_bytes + n * cout * 2 * 4)
    vmem1 = (2 * cin * hw * x_bytes                       # double-buffered image
             + 2 * (cout * hw * act_bytes + cout * 2 * 4)  # double-buffered outputs
             + 9 * cout * cin * mm_bytes + 9 * hw * mm_bytes   # resident weights/masks
             + 2 * cin * hw * mm_bytes + cout * hw * 4)    # tap temporaries + f32 acc

    y_flat, stats = pl.pallas_call(
        make_conv_stats_kernel(h, w, mm_dtype),
        grid=(n,),
        in_specs=[
            pl.BlockSpec((1, cin, hw), lambda i: (i, 0, 0)),
            pl.BlockSpec((9, cout, cin), lambda i: (0, 0, 0)),
            pl.BlockSpec((9, 1, hw), lambda i: (0, 0, 0)),
        ],
        out_specs=(
            pl.BlockSpec((1, cout, hw), lambda i: (i, 0, 0)),
            pl.BlockSpec((1, cout, 2), lambda i: (i, 0, 0)),
        ),
        out_shape=(
            jax.ShapeDtypeStruct((n, cout, hw), act_dtype),
            jax.ShapeDtypeStruct((n, cout, 2), jnp.float32),
        ),
        compiler_params=pltpu.CompilerParams(
            dimension_semantics=("parallel",),
            vmem_limit_bytes=_vmem_limit(vmem1)),
        cost_estimate=pl.CostEstimate(flops=flops1, transcendentals=0,
                                      bytes_accessed=bytes1),
    )(x_flat, w_taps, tap_masks)

    # ---- BatchNorm finalize: GLOBAL batch statistics (training-mode, biased var) -----
    count = n * hw
    ch_sum = jnp.sum(stats[:, :, 0], axis=0)
    ch_sumsq = jnp.sum(stats[:, :, 1], axis=0)
    mean = ch_sum / count
    var = jnp.maximum(ch_sumsq / count - mean * mean, 0.0)
    scale = bn_gamma.astype(jnp.float32) * jax.lax.rsqrt(var + EPS)
    shift = bn_beta.astype(jnp.float32) - mean * scale
    bn_ss = jnp.stack([scale, shift], axis=1)[:, :, None]          # (Cout, 2, 1)

    # separable bilinear matrices (KB-sized, not the quadratic kron)
    ah = bilinear_matrix(h, scale_factor).astype(mm_dtype)         # (Hout, H)
    awt = bilinear_matrix(w, scale_factor).T.astype(mm_dtype)      # (W, Wout)

    y4 = y_flat.reshape(n, cout, h, w)        # free reshape of the HBM activation

    c_blk = _choose_channel_block(cout, h, w, hout, wout, act_bytes,
                                  budget_bytes=_MAX_VMEM - 8 * 1024 * 1024)
    flops2 = n * cout * (3 * h * w + 2 * h * w * wout + 2 * hout * h * wout)
    bytes2 = (n * cout * h * w * act_bytes + cout * 2 * 4
              + (hout * h + w * wout) * mm_bytes + n * hout * cout * wout * 4)
    vmem2 = _pass2_vmem_bytes(c_blk, h, w, hout, wout, act_bytes)

    out_flat = pl.pallas_call(
        make_bn_relu_upsample_kernel(c_blk, h, w, hout, wout, mm_dtype),
        grid=(n, cout // c_blk),
        in_specs=[
            pl.BlockSpec((1, c_blk, h, w), lambda i, c: (i, c, 0, 0)),
            pl.BlockSpec((c_blk, 2, 1), lambda i, c: (c, 0, 0)),
            pl.BlockSpec((hout, h), lambda i, c: (0, 0)),
            pl.BlockSpec((w, wout), lambda i, c: (0, 0)),
        ],
        out_specs=pl.BlockSpec((1, hout, c_blk * wout), lambda i, c: (i, 0, c)),
        out_shape=jax.ShapeDtypeStruct((n, hout, cout * wout), jnp.float32),
        compiler_params=pltpu.CompilerParams(
            dimension_semantics=("parallel", "parallel"),
            vmem_limit_bytes=_vmem_limit(vmem2)),
        cost_estimate=pl.CostEstimate(flops=flops2, transcendentals=0,
                                      bytes_accessed=bytes2),
    )(y4, bn_ss, ah, awt)

    # lane-dense kernel output -> NCHW: free reshape + ONE cheap XLA transpose.
    return jnp.transpose(out_flat.reshape(n, hout, cout, wout), (0, 2, 1, 3))


# --------------------------------------------------------------------------------------
# Pure-JAX f32 reference for correctness checking.
# --------------------------------------------------------------------------------------
def reference(x_nchw, conv_w_oihw, bn_gamma, bn_beta, scale_factor=2.0):
    h, w = x_nchw.shape[2], x_nchw.shape[3]
    out = jax.lax.conv_general_dilated(
        x_nchw, conv_w_oihw, window_strides=(1, 1), padding="SAME",
        dimension_numbers=("NCHW", "OIHW", "NCHW"))
    mean = out.mean(axis=(0, 2, 3), keepdims=True)
    var = ((out - mean) ** 2).mean(axis=(0, 2, 3), keepdims=True)
    out = (out - mean) * jax.lax.rsqrt(var + EPS)
    out = out * bn_gamma[None, :, None, None] + bn_beta[None, :, None, None]
    out = jnp.maximum(out, 0.0)
    ah = bilinear_matrix(h, scale_factor)
    aw = bilinear_matrix(w, scale_factor)
    out = jnp.einsum("oh,nchw->ncow", ah, out)
    out = jnp.einsum("pw,ncow->ncop", aw, out)
    return out


if __name__ == "__main__":
    key = jax.random.PRNGKey(0)
    k1, k2, k3, k4 = jax.random.split(key, 4)

    N, CIN, COUT, H, W = 2, 4, 8, 16, 16
    SCALE = 2.0

    x = jax.random.normal(k1, (N, CIN, H, W), dtype=jnp.float32)
    conv_w = jax.random.normal(k2, (COUT, CIN, 3, 3), dtype=jnp.float32) * 0.1
    gamma = 1.0 + 0.1 * jax.random.normal(k3, (COUT,), dtype=jnp.float32)
    beta = 0.1 * jax.random.normal(k4, (COUT,), dtype=jnp.float32)

    fwd_bf16 = jax.jit(functools.partial(upsampling_block,
                                         scale_factor=SCALE, use_bf16=True))
    fwd_f32 = jax.jit(functools.partial(upsampling_block,
                                        scale_factor=SCALE, use_bf16=False))

    out_bf16 = jax.block_until_ready(fwd_bf16(x, conv_w, gamma, beta))
    out_f32 = jax.block_until_ready(fwd_f32(x, conv_w, gamma, beta))
    ref = reference(x, conv_w, gamma, beta, scale_factor=SCALE)

    expected_shape = (N, COUT, int(H * SCALE), int(W * SCALE))
    assert out_bf16.shape == expected_shape, out_bf16.shape
    assert out_f32.shape == expected_shape, out_f32.shape

    # f32 path: tight check of the kernel structure (conv / BN / ReLU / upsample).
    err_f32 = float(jnp.max(jnp.abs(out_f32 - ref)))
    assert err_f32 < 1e-3, err_f32
    # bf16-MXU path (default): bf16-level tolerance vs the f32 reference.
    err_bf16 = float(jnp.max(jnp.abs(out_bf16 - ref)))
    assert err_bf16 < 6e-2, err_bf16

    print("KERNEL_OK")
</pallas_src>

<mosaic_0001>
module attributes {stable_mosaic.version = 11 : i64} {
  func.func @kernel(%arg0: i32, %arg1: memref<1x4x256xf32, #tpu.memory_space<vmem>>, %arg2: memref<9x8x4xbf16, #tpu.memory_space<vmem>>, %arg3: memref<9x1x256xbf16, #tpu.memory_space<vmem>>, %arg4: memref<1x8x256xbf16, #tpu.memory_space<vmem>>, %arg5: memref<1x8x2xf32, #tpu.memory_space<vmem>>) attributes {dimension_semantics = [#tpu.dimension_semantics<parallel>], iteration_bounds = array<i64: 2>, scalar_prefetch = 0 : i64, scratch_operands = 0 : i64, tpu.core_type = #tpu.core_type<tc>, window_params = [{transform_indices = @transform_0, window_bounds = array<i64: 1, 4, 256>}, {pipeline_mode = #tpu.pipeline_mode<synchronous>, transform_indices = @transform_1, window_bounds = array<i64: 9, 8, 4>}, {pipeline_mode = #tpu.pipeline_mode<synchronous>, transform_indices = @transform_2, window_bounds = array<i64: 9, 1, 256>}, {transform_indices = @transform_3, window_bounds = array<i64: 1, 8, 256>}, {transform_indices = @transform_4, window_bounds = array<i64: 1, 8, 2>}]} {
    %c0 = arith.constant 0 : index
    %c0_0 = arith.constant 0 : index
    %c0_1 = arith.constant 0 : index
    %0 = vector.load %arg1[%c0, %c0_0, %c0_1] : memref<1x4x256xf32, #tpu.memory_space<vmem>>, vector<1x4x256xf32>
    %1 = vector.shape_cast %0 : vector<1x4x256xf32> to vector<4x256xf32>
    %2 = arith.truncf %1 : vector<4x256xf32> to vector<4x256xbf16>
    %3 = vector.extract_strided_slice %2 {offsets = [0, 239], sizes = [4, 17], strides = [1, 1]} : vector<4x256xbf16> to vector<4x17xbf16>
    %4 = vector.extract_strided_slice %2 {offsets = [0, 0], sizes = [4, 239], strides = [1, 1]} : vector<4x256xbf16> to vector<4x239xbf16>
    %5 = tpu.concatenate %3, %4 in 1 : vector<4x17xbf16>, vector<4x239xbf16> -> vector<4x256xbf16>
    %c0_2 = arith.constant 0 : index
    %c0_3 = arith.constant 0 : index
    %c0_4 = arith.constant 0 : index
    %6 = vector.load %arg3[%c0_2, %c0_3, %c0_4] : memref<9x1x256xbf16, #tpu.memory_space<vmem>>, vector<1x1x256xbf16>
    %7 = vector.shape_cast %6 : vector<1x1x256xbf16> to vector<1x256xbf16>
    %8 = vector.broadcast %7 : vector<1x256xbf16> to vector<4x256xbf16>
    %9 = arith.mulf %5, %8 : vector<4x256xbf16>
    %c0_5 = arith.constant 0 : index
    %c0_6 = arith.constant 0 : index
    %c0_7 = arith.constant 0 : index
    %10 = vector.load %arg2[%c0_5, %c0_6, %c0_7] : memref<9x8x4xbf16, #tpu.memory_space<vmem>>, vector<1x8x4xbf16>
    %11 = vector.shape_cast %10 : vector<1x8x4xbf16> to vector<8x4xbf16>
    %cst = arith.constant dense<0.000000e+00> : vector<8x256xf32>
    %12 = tpu.matmul %11, %9, %cst {dimension_numbers = #tpu.dot_dimension_numbers<[1], [0], [0], [1], [0, 0, 1, 1], [], []>} : vector<8x4xbf16>, vector<4x256xbf16>, vector<8x256xf32> -> vector<8x256xf32>
    %13 = vector.extract_strided_slice %2 {offsets = [0, 240], sizes = [4, 16], strides = [1, 1]} : vector<4x256xbf16> to vector<4x16xbf16>
    %14 = vector.extract_strided_slice %2 {offsets = [0, 0], sizes = [4, 240], strides = [1, 1]} : vector<4x256xbf16> to vector<4x240xbf16>
    %15 = tpu.concatenate %13, %14 in 1 : vector<4x16xbf16>, vector<4x240xbf16> -> vector<4x256xbf16>
    %c1 = arith.constant 1 : index
    %c0_8 = arith.constant 0 : index
    %c0_9 = arith.constant 0 : index
    %16 = vector.load %arg3[%c1, %c0_8, %c0_9] : memref<9x1x256xbf16, #tpu.memory_space<vmem>>, vector<1x1x256xbf16>
    %17 = vector.shape_cast %16 : vector<1x1x256xbf16> to vector<1x256xbf16>
    %18 = vector.broadcast %17 : vector<1x256xbf16> to vector<4x256xbf16>
    %19 = arith.mulf %15, %18 : vector<4x256xbf16>
    %c1_10 = arith.constant 1 : index
    %c0_11 = arith.constant 0 : index
    %c0_12 = arith.constant 0 : index
    %20 = vector.load %arg2[%c1_10, %c0_11, %c0_12] : memref<9x8x4xbf16, #tpu.memory_space<vmem>>, vector<1x8x4xbf16>
    %21 = vector.shape_cast %20 : vector<1x8x4xbf16> to vector<8x4xbf16>
    %cst_13 = arith.constant dense<0.000000e+00> : vector<8x256xf32>
    %22 = tpu.matmul %21, %19, %cst_13 {dimension_numbers = #tpu.dot_dimension_numbers<[1], [0], [0], [1], [0, 0, 1, 1], [], []>} : vector<8x4xbf16>, vector<4x256xbf16>, vector<8x256xf32> -> vector<8x256xf32>
    %23 = arith.addf %12, %22 : vector<8x256xf32>
    %24 = vector.extract_strided_slice %2 {offsets = [0, 241], sizes = [4, 15], strides = [1, 1]} : vector<4x256xbf16> to vector<4x15xbf16>
    %25 = vector.extract_strided_slice %2 {offsets = [0, 0], sizes = [4, 241], strides = [1, 1]} : vector<4x256xbf16> to vector<4x241xbf16>
    %26 = tpu.concatenate %24, %25 in 1 : vector<4x15xbf16>, vector<4x241xbf16> -> vector<4x256xbf16>
    %c2 = arith.constant 2 : index
    %c0_14 = arith.constant 0 : index
    %c0_15 = arith.constant 0 : index
    %27 = vector.load %arg3[%c2, %c0_14, %c0_15] : memref<9x1x256xbf16, #tpu.memory_space<vmem>>, vector<1x1x256xbf16>
    %28 = vector.shape_cast %27 : vector<1x1x256xbf16> to vector<1x256xbf16>
    %29 = vector.broadcast %28 : vector<1x256xbf16> to vector<4x256xbf16>
    %30 = arith.mulf %26, %29 : vector<4x256xbf16>
    %c2_16 = arith.constant 2 : index
    %c0_17 = arith.constant 0 : index
    %c0_18 = arith.constant 0 : index
    %31 = vector.load %arg2[%c2_16, %c0_17, %c0_18] : memref<9x8x4xbf16, #tpu.memory_space<vmem>>, vector<1x8x4xbf16>
    %32 = vector.shape_cast %31 : vector<1x8x4xbf16> to vector<8x4xbf16>
    %cst_19 = arith.constant dense<0.000000e+00> : vector<8x256xf32>
    %33 = tpu.matmul %32, %30, %cst_19 {dimension_numbers = #tpu.dot_dimension_numbers<[1], [0], [0], [1], [0, 0, 1, 1], [], []>} : vector<8x4xbf16>, vector<4x256xbf16>, vector<8x256xf32> -> vector<8x256xf32>
    %34 = arith.addf %23, %33 : vector<8x256xf32>
    %35 = vector.extract_strided_slice %2 {offsets = [0, 255], sizes = [4, 1], strides = [1, 1]} : vector<4x256xbf16> to vector<4x1xbf16>
    %36 = vector.extract_strided_slice %2 {offsets = [0, 0], sizes = [4, 255], strides = [1, 1]} : vector<4x256xbf16> to vector<4x255xbf16>
    %37 = tpu.concatenate %35, %36 in 1 : vector<4x1xbf16>, vector<4x255xbf16> -> vector<4x256xbf16>
    %c3 = arith.constant 3 : index
    %c0_20 = arith.constant 0 : index
    %c0_21 = arith.constant 0 : index
    %38 = vector.load %arg3[%c3, %c0_20, %c0_21] : memref<9x1x256xbf16, #tpu.memory_space<vmem>>, vector<1x1x256xbf16>
    %39 = vector.shape_cast %38 : vector<1x1x256xbf16> to vector<1x256xbf16>
    %40 = vector.broadcast %39 : vector<1x256xbf16> to vector<4x256xbf16>
    %41 = arith.mulf %37, %40 : vector<4x256xbf16>
    %c3_22 = arith.constant 3 : index
    %c0_23 = arith.constant 0 : index
    %c0_24 = arith.constant 0 : index
    %42 = vector.load %arg2[%c3_22, %c0_23, %c0_24] : memref<9x8x4xbf16, #tpu.memory_space<vmem>>, vector<1x8x4xbf16>
    %43 = vector.shape_cast %42 : vector<1x8x4xbf16> to vector<8x4xbf16>
    %cst_25 = arith.constant dense<0.000000e+00> : vector<8x256xf32>
    %44 = tpu.matmul %43, %41, %cst_25 {dimension_numbers = #tpu.dot_dimension_numbers<[1], [0], [0], [1], [0, 0, 1, 1], [], []>} : vector<8x4xbf16>, vector<4x256xbf16>, vector<8x256xf32> -> vector<8x256xf32>
    %45 = arith.addf %34, %44 : vector<8x256xf32>
    %c4 = arith.constant 4 : index
    %c0_26 = arith.constant 0 : index
    %c0_27 = arith.constant 0 : index
    %46 = vector.load %arg2[%c4, %c0_26, %c0_27] : memref<9x8x4xbf16, #tpu.memory_space<vmem>>, vector<1x8x4xbf16>
    %47 = vector.shape_cast %46 : vector<1x8x4xbf16> to vector<8x4xbf16>
    %cst_28 = arith.constant dense<0.000000e+00> : vector<8x256xf32>
    %48 = tpu.matmul %47, %2, %cst_28 {dimension_numbers = #tpu.dot_dimension_numbers<[1], [0], [0], [1], [0, 0, 1, 1], [], []>} : vector<8x4xbf16>, vector<4x256xbf16>, vector<8x256xf32> -> vector<8x256xf32>
    %49 = arith.addf %45, %48 : vector<8x256xf32>
    %50 = vector.extract_strided_slice %2 {offsets = [0, 1], sizes = [4, 255], strides = [1, 1]} : vector<4x256xbf16> to vector<4x255xbf16>
    %51 = vector.extract_strided_slice %2 {offsets = [0, 0], sizes = [4, 1], strides = [1, 1]} : vector<4x256xbf16> to vector<4x1xbf16>
    %52 = tpu.concatenate %50, %51 in 1 : vector<4x255xbf16>, vector<4x1xbf16> -> vector<4x256xbf16>
    %c5 = arith.constant 5 : index
    %c0_29 = arith.constant 0 : index
    %c0_30 = arith.constant 0 : index
    %53 = vector.load %arg3[%c5, %c0_29, %c0_30] : memref<9x1x256xbf16, #tpu.memory_space<vmem>>, vector<1x1x256xbf16>
    %54 = vector.shape_cast %53 : vector<1x1x256xbf16> to vector<1x256xbf16>
    %55 = vector.broadcast %54 : vector<1x256xbf16> to vector<4x256xbf16>
    %56 = arith.mulf %52, %55 : vector<4x256xbf16>
    %c5_31 = arith.constant 5 : index
    %c0_32 = arith.constant 0 : index
    %c0_33 = arith.constant 0 : index
    %57 = vector.load %arg2[%c5_31, %c0_32, %c0_33] : memref<9x8x4xbf16, #tpu.memory_space<vmem>>, vector<1x8x4xbf16>
    %58 = vector.shape_cast %57 : vector<1x8x4xbf16> to vector<8x4xbf16>
    %cst_34 = arith.constant dense<0.000000e+00> : vector<8x256xf32>
    %59 = tpu.matmul %58, %56, %cst_34 {dimension_numbers = #tpu.dot_dimension_numbers<[1], [0], [0], [1], [0, 0, 1, 1], [], []>} : vector<8x4xbf16>, vector<4x256xbf16>, vector<8x256xf32> -> vector<8x256xf32>
    %60 = arith.addf %49, %59 : vector<8x256xf32>
    %61 = vector.extract_strided_slice %2 {offsets = [0, 15], sizes = [4, 241], strides = [1, 1]} : vector<4x256xbf16> to vector<4x241xbf16>
    %62 = vector.extract_strided_slice %2 {offsets = [0, 0], sizes = [4, 15], strides = [1, 1]} : vector<4x256xbf16> to vector<4x15xbf16>
    %63 = tpu.concatenate %61, %62 in 1 : vector<4x241xbf16>, vector<4x15xbf16> -> vector<4x256xbf16>
    %c6 = arith.constant 6 : index
    %c0_35 = arith.constant 0 : index
    %c0_36 = arith.constant 0 : index
    %64 = vector.load %arg3[%c6, %c0_35, %c0_36] : memref<9x1x256xbf16, #tpu.memory_space<vmem>>, vector<1x1x256xbf16>
    %65 = vector.shape_cast %64 : vector<1x1x256xbf16> to vector<1x256xbf16>
    %66 = vector.broadcast %65 : vector<1x256xbf16> to vector<4x256xbf16>
    %67 = arith.mulf %63, %66 : vector<4x256xbf16>
    %c6_37 = arith.constant 6 : index
    %c0_38 = arith.constant 0 : index
    %c0_39 = arith.constant 0 : index
    %68 = vector.load %arg2[%c6_37, %c0_38, %c0_39] : memref<9x8x4xbf16, #tpu.memory_space<vmem>>, vector<1x8x4xbf16>
    %69 = vector.shape_cast %68 : vector<1x8x4xbf16> to vector<8x4xbf16>
    %cst_40 = arith.constant dense<0.000000e+00> : vector<8x256xf32>
    %70 = tpu.matmul %69, %67, %cst_40 {dimension_numbers = #tpu.dot_dimension_numbers<[1], [0], [0], [1], [0, 0, 1, 1], [], []>} : vector<8x4xbf16>, vector<4x256xbf16>, vector<8x256xf32> -> vector<8x256xf32>
    %71 = arith.addf %60, %70 : vector<8x256xf32>
    %72 = vector.extract_strided_slice %2 {offsets = [0, 16], sizes = [4, 240], strides = [1, 1]} : vector<4x256xbf16> to vector<4x240xbf16>
    %73 = vector.extract_strided_slice %2 {offsets = [0, 0], sizes = [4, 16], strides = [1, 1]} : vector<4x256xbf16> to vector<4x16xbf16>
    %74 = tpu.concatenate %72, %73 in 1 : vector<4x240xbf16>, vector<4x16xbf16> -> vector<4x256xbf16>
    %c7 = arith.constant 7 : index
    %c0_41 = arith.constant 0 : index
    %c0_42 = arith.constant 0 : index
    %75 = vector.load %arg3[%c7, %c0_41, %c0_42] : memref<9x1x256xbf16, #tpu.memory_space<vmem>>, vector<1x1x256xbf16>
    %76 = vector.shape_cast %75 : vector<1x1x256xbf16> to vector<1x256xbf16>
    %77 = vector.broadcast %76 : vector<1x256xbf16> to vector<4x256xbf16>
    %78 = arith.mulf %74, %77 : vector<4x256xbf16>
    %c7_43 = arith.constant 7 : index
    %c0_44 = arith.constant 0 : index
    %c0_45 = arith.constant 0 : index
    %79 = vector.load %arg2[%c7_43, %c0_44, %c0_45] : memref<9x8x4xbf16, #tpu.memory_space<vmem>>, vector<1x8x4xbf16>
    %80 = vector.shape_cast %79 : vector<1x8x4xbf16> to vector<8x4xbf16>
    %cst_46 = arith.constant dense<0.000000e+00> : vector<8x256xf32>
    %81 = tpu.matmul %80, %78, %cst_46 {dimension_numbers = #tpu.dot_dimension_numbers<[1], [0], [0], [1], [0, 0, 1, 1], [], []>} : vector<8x4xbf16>, vector<4x256xbf16>, vector<8x256xf32> -> vector<8x256xf32>
    %82 = arith.addf %71, %81 : vector<8x256xf32>
    %83 = vector.extract_strided_slice %2 {offsets = [0, 17], sizes = [4, 239], strides = [1, 1]} : vector<4x256xbf16> to vector<4x239xbf16>
    %84 = vector.extract_strided_slice %2 {offsets = [0, 0], sizes = [4, 17], strides = [1, 1]} : vector<4x256xbf16> to vector<4x17xbf16>
    %85 = tpu.concatenate %83, %84 in 1 : vector<4x239xbf16>, vector<4x17xbf16> -> vector<4x256xbf16>
    %c8 = arith.constant 8 : index
    %c0_47 = arith.constant 0 : index
    %c0_48 = arith.constant 0 : index
    %86 = vector.load %arg3[%c8, %c0_47, %c0_48] : memref<9x1x256xbf16, #tpu.memory_space<vmem>>, vector<1x1x256xbf16>
    %87 = vector.shape_cast %86 : vector<1x1x256xbf16> to vector<1x256xbf16>
    %88 = vector.broadcast %87 : vector<1x256xbf16> to vector<4x256xbf16>
    %89 = arith.mulf %85, %88 : vector<4x256xbf16>
    %c8_49 = arith.constant 8 : index
    %c0_50 = arith.constant 0 : index
    %c0_51 = arith.constant 0 : index
    %90 = vector.load %arg2[%c8_49, %c0_50, %c0_51] : memref<9x8x4xbf16, #tpu.memory_space<vmem>>, vector<1x8x4xbf16>
    %91 = vector.shape_cast %90 : vector<1x8x4xbf16> to vector<8x4xbf16>
    %cst_52 = arith.constant dense<0.000000e+00> : vector<8x256xf32>
    %92 = tpu.matmul %91, %89, %cst_52 {dimension_numbers = #tpu.dot_dimension_numbers<[1], [0], [0], [1], [0, 0, 1, 1], [], []>} : vector<8x4xbf16>, vector<4x256xbf16>, vector<8x256xf32> -> vector<8x256xf32>
    %93 = arith.addf %82, %92 : vector<8x256xf32>
    %cst_53 = arith.constant dense<0.000000e+00> : vector<8xf32>
    %94 = vector.multi_reduction <add>, %93, %cst_53 [1] : vector<8x256xf32> to vector<8xf32>
    %95 = vector.shape_cast %94 : vector<8xf32> to vector<8x1xf32>
    %c0_54 = arith.constant 0 : index
    %c0_55 = arith.constant 0 : index
    %c0_56 = arith.constant 0 : index
    %96 = vector.load %arg5[%c0_54, %c0_55, %c0_56] : memref<1x8x2xf32, #tpu.memory_space<vmem>>, vector<1x8x1xf32>
    %97 = vector.shape_cast %96 : vector<1x8x1xf32> to vector<8x1xf32>
    %98 = vector.shape_cast %95 : vector<8x1xf32> to vector<1x8x1xf32>
    tpu.vector_store %arg5[%c0_54, %c0_55, %c0_56], %98 {strides = array<i32>} : memref<1x8x2xf32, #tpu.memory_space<vmem>>, vector<1x8x1xf32>,
    %99 = arith.mulf %93, %93 : vector<8x256xf32>
    %cst_57 = arith.constant dense<0.000000e+00> : vector<8xf32>
    %100 = vector.multi_reduction <add>, %99, %cst_57 [1] : vector<8x256xf32> to vector<8xf32>
    %101 = vector.shape_cast %100 : vector<8xf32> to vector<8x1xf32>
    %c0_58 = arith.constant 0 : index
    %c0_59 = arith.constant 0 : index
    %c1_60 = arith.constant 1 : index
    %102 = vector.load %arg5[%c0_58, %c0_59, %c1_60] : memref<1x8x2xf32, #tpu.memory_space<vmem>>, vector<1x8x1xf32>
    %103 = vector.shape_cast %102 : vector<1x8x1xf32> to vector<8x1xf32>
    %104 = vector.shape_cast %101 : vector<8x1xf32> to vector<1x8x1xf32>
    tpu.vector_store %arg5[%c0_58, %c0_59, %c1_60], %104 {strides = array<i32>} : memref<1x8x2xf32, #tpu.memory_space<vmem>>, vector<1x8x1xf32>,
    %105 = arith.truncf %93 : vector<8x256xf32> to vector<8x256xbf16>
    %c0_61 = arith.constant 0 : index
    %c0_62 = arith.constant 0 : index
    %c0_63 = arith.constant 0 : index
    %106 = vector.load %arg4[%c0_61, %c0_62, %c0_63] : memref<1x8x256xbf16, #tpu.memory_space<vmem>>, vector<1x8x256xbf16>
    %107 = vector.shape_cast %106 : vector<1x8x256xbf16> to vector<8x256xbf16>
    %108 = vector.shape_cast %105 : vector<8x256xbf16> to vector<1x8x256xbf16>
    tpu.vector_store %arg4[%c0_61, %c0_62, %c0_63], %108 {strides = array<i32>} : memref<1x8x256xbf16, #tpu.memory_space<vmem>>, vector<1x8x256xbf16>,
    return
  }
  func.func @transform_0(%arg0: i32) -> (i32, i32, i32) {
    %c0_i32 = arith.constant 0 : i32
    %c0_i32_0 = arith.constant 0 : i32
    %c0_i32_1 = arith.constant 0 : i32
    return %arg0, %c0_i32, %c0_i32_0 : i32, i32, i32
  }
  func.func @transform_1(%arg0: i32) -> (i32, i32, i32) {
    %c0_i32 = arith.constant 0 : i32
    %c0_i32_0 = arith.constant 0 : i32
    %c0_i32_1 = arith.constant 0 : i32
    %c0_i32_2 = arith.constant 0 : i32
    return %c0_i32, %c0_i32_0, %c0_i32_1 : i32, i32, i32
  }
  func.func @transform_2(%arg0: i32) -> (i32, i32, i32) {
    %c0_i32 = arith.constant 0 : i32
    %c0_i32_0 = arith.constant 0 : i32
    %c0_i32_1 = arith.constant 0 : i32
    %c0_i32_2 = arith.constant 0 : i32
    return %c0_i32, %c0_i32_0, %c0_i32_1 : i32, i32, i32
  }
  func.func @transform_3(%arg0: i32) -> (i32, i32, i32) {
    %c0_i32 = arith.constant 0 : i32
    %c0_i32_0 = arith.constant 0 : i32
    %c0_i32_1 = arith.constant 0 : i32
    return %arg0, %c0_i32, %c0_i32_0 : i32, i32, i32
  }
  func.func @transform_4(%arg0: i32) -> (i32, i32, i32) {
    %c0_i32 = arith.constant 0 : i32
    %c0_i32_0 = arith.constant 0 : i32
    %c0_i32_1 = arith.constant 0 : i32
    return %arg0, %c0_i32, %c0_i32_0 : i32, i32, i32
  }
}

module attributes {stable_mosaic.version = 11 : i64} {
  func.func @kernel(%arg0: i32, %arg1: i32, %arg2: memref<1x8x16x16xbf16, #tpu.memory_space<vmem>>, %arg3: memref<8x2x1xf32, #tpu.memory_space<vmem>>, %arg4: memref<32x16xbf16, #tpu.memory_space<vmem>>, %arg5: memref<16x32xbf16, #tpu.memory_space<vmem>>, %arg6: memref<1x32x256xf32, #tpu.memory_space<vmem>>) attributes {dimension_semantics = [#tpu.dimension_semantics<parallel>, #tpu.dimension_semantics<parallel>], iteration_bounds = array<i64: 2, 1>, scalar_prefetch = 0 : i64, scratch_operands = 0 : i64, tpu.core_type = #tpu.core_type<tc>, window_params = [{transform_indices = @transform_0, window_bounds = array<i64: 1, 8, 16, 16>}, {transform_indices = @transform_1, window_bounds = array<i64: 8, 2, 1>}, {pipeline_mode = #tpu.pipeline_mode<synchronous>, transform_indices = @transform_2, window_bounds = array<i64: 32, 16>}, {pipeline_mode = #tpu.pipeline_mode<synchronous>, transform_indices = @transform_3, window_bounds = array<i64: 16, 32>}, {transform_indices = @transform_4, window_bounds = array<i64: 1, 32, 256>}]} {
    %c0 = arith.constant 0 : index
    %c0_0 = arith.constant 0 : index
    %c0_1 = arith.constant 0 : index
    %c0_2 = arith.constant 0 : index
    %0 = vector.load %arg2[%c0, %c0_0, %c0_1, %c0_2] : memref<1x8x16x16xbf16, #tpu.memory_space<vmem>>, vector<1x8x16x16xbf16>
    %1 = vector.shape_cast %0 : vector<1x8x16x16xbf16> to vector<8x16x16xbf16>
    %2 = arith.extf %1 : vector<8x16x16xbf16> to vector<8x16x16xf32>
    %c0_3 = arith.constant 0 : index
    %c0_4 = arith.constant 0 : index
    %c0_5 = arith.constant 0 : index
    %3 = vector.load %arg3[%c0_3, %c0_4, %c0_5] : memref<8x2x1xf32, #tpu.memory_space<vmem>>, vector<8x2x1xf32>
    %4 = vector.extract_strided_slice %3 {offsets = [0, 0, 0], sizes = [8, 1, 1], strides = [1, 1, 1]} : vector<8x2x1xf32> to vector<8x1x1xf32>
    %5 = vector.broadcast %4 : vector<8x1x1xf32> to vector<8x16x16xf32>
    %6 = arith.mulf %2, %5 : vector<8x16x16xf32>
    %7 = vector.extract_strided_slice %3 {offsets = [0, 1, 0], sizes = [8, 1, 1], strides = [1, 1, 1]} : vector<8x2x1xf32> to vector<8x1x1xf32>
    %8 = vector.broadcast %7 : vector<8x1x1xf32> to vector<8x16x16xf32>
    %9 = arith.addf %6, %8 : vector<8x16x16xf32>
    %cst = arith.constant 0.000000e+00 : f32
    %10 = vector.broadcast %cst : f32 to vector<8x16x16xf32>
    %11 = arith.maximumf %9, %10 : vector<8x16x16xf32>
    %12 = vector.shape_cast %11 : vector<8x16x16xf32> to vector<128x16xf32>
    %13 = arith.truncf %12 : vector<128x16xf32> to vector<128x16xbf16>
    %c0_6 = arith.constant 0 : index
    %c0_7 = arith.constant 0 : index
    %14 = vector.load %arg5[%c0_6, %c0_7] : memref<16x32xbf16, #tpu.memory_space<vmem>>, vector<16x32xbf16>
    %cst_8 = arith.constant dense<0.000000e+00> : vector<128x32xf32>
    %15 = tpu.matmul %13, %14, %cst_8 {dimension_numbers = #tpu.dot_dimension_numbers<[1], [0], [0], [1], [0, 0, 1, 1], [], []>} : vector<128x16xbf16>, vector<16x32xbf16>, vector<128x32xf32> -> vector<128x32xf32>
    %16 = arith.truncf %15 : vector<128x32xf32> to vector<128x32xbf16>
    %17 = vector.extract_strided_slice %16 {offsets = [0, 0], sizes = [16, 32], strides = [1, 1]} : vector<128x32xbf16> to vector<16x32xbf16>
    %18 = vector.extract_strided_slice %16 {offsets = [16, 0], sizes = [16, 32], strides = [1, 1]} : vector<128x32xbf16> to vector<16x32xbf16>
    %19 = vector.extract_strided_slice %16 {offsets = [32, 0], sizes = [16, 32], strides = [1, 1]} : vector<128x32xbf16> to vector<16x32xbf16>
    %20 = vector.extract_strided_slice %16 {offsets = [48, 0], sizes = [16, 32], strides = [1, 1]} : vector<128x32xbf16> to vector<16x32xbf16>
    %21 = vector.extract_strided_slice %16 {offsets = [64, 0], sizes = [16, 32], strides = [1, 1]} : vector<128x32xbf16> to vector<16x32xbf16>
    %22 = vector.extract_strided_slice %16 {offsets = [80, 0], sizes = [16, 32], strides = [1, 1]} : vector<128x32xbf16> to vector<16x32xbf16>
    %23 = vector.extract_strided_slice %16 {offsets = [96, 0], sizes = [16, 32], strides = [1, 1]} : vector<128x32xbf16> to vector<16x32xbf16>
    %24 = vector.extract_strided_slice %16 {offsets = [112, 0], sizes = [16, 32], strides = [1, 1]} : vector<128x32xbf16> to vector<16x32xbf16>
    %25 = tpu.concatenate %17, %18, %19, %20, %21, %22, %23, %24 in 1 : vector<16x32xbf16>, vector<16x32xbf16>, vector<16x32xbf16>, vector<16x32xbf16>, vector<16x32xbf16>, vector<16x32xbf16>, vector<16x32xbf16>, vector<16x32xbf16> -> vector<16x256xbf16>
    %c0_9 = arith.constant 0 : index
    %c0_10 = arith.constant 0 : index
    %26 = vector.load %arg4[%c0_9, %c0_10] : memref<32x16xbf16, #tpu.memory_space<vmem>>, vector<32x16xbf16>
    %cst_11 = arith.constant dense<0.000000e+00> : vector<32x256xf32>
    %27 = tpu.matmul %26, %25, %cst_11 {dimension_numbers = #tpu.dot_dimension_numbers<[1], [0], [0], [1], [0, 0, 1, 1], [], []>} : vector<32x16xbf16>, vector<16x256xbf16>, vector<32x256xf32> -> vector<32x256xf32>
    %c0_12 = arith.constant 0 : index
    %c0_13 = arith.constant 0 : index
    %c0_14 = arith.constant 0 : index
    %28 = vector.load %arg6[%c0_12, %c0_13, %c0_14] : memref<1x32x256xf32, #tpu.memory_space<vmem>>, vector<1x32x256xf32>
    %29 = vector.shape_cast %28 : vector<1x32x256xf32> to vector<32x256xf32>
    %30 = vector.shape_cast %27 : vector<32x256xf32> to vector<1x32x256xf32>
    tpu.vector_store %arg6[%c0_12, %c0_13, %c0_14], %30 {strides = array<i32>} : memref<1x32x256xf32, #tpu.memory_space<vmem>>, vector<1x32x256xf32>,
    return
  }
  func.func @transform_0(%arg0: i32, %arg1: i32) -> (i32, i32, i32, i32) {
    %c0_i32 = arith.constant 0 : i32
    %c0_i32_0 = arith.constant 0 : i32
    %c0_i32_1 = arith.constant 0 : i32
    return %arg0, %arg1, %c0_i32, %c0_i32_0 : i32, i32, i32, i32
  }
  func.func @transform_1(%arg0: i32, %arg1: i32) -> (i32, i32, i32) {
    %c0_i32 = arith.constant 0 : i32
    %c0_i32_0 = arith.constant 0 : i32
    %c0_i32_1 = arith.constant 0 : i32
    return %arg1, %c0_i32, %c0_i32_0 : i32, i32, i32
  }
  func.func @transform_2(%arg0: i32, %arg1: i32) -> (i32, i32) {
    %c0_i32 = arith.constant 0 : i32
    %c0_i32_0 = arith.constant 0 : i32
    %c0_i32_1 = arith.constant 0 : i32
    return %c0_i32, %c0_i32_0 : i32, i32
  }
  func.func @transform_3(%arg0: i32, %arg1: i32) -> (i32, i32) {
    %c0_i32 = arith.constant 0 : i32
    %c0_i32_0 = arith.constant 0 : i32
    %c0_i32_1 = arith.constant 0 : i32
    return %c0_i32, %c0_i32_0 : i32, i32
  }
  func.func @transform_4(%arg0: i32, %arg1: i32) -> (i32, i32, i32) {
    %c0_i32 = arith.constant 0 : i32
    %c0_i32_0 = arith.constant 0 : i32
    return %arg0, %c0_i32, %arg1 : i32, i32, i32
  }
}

</mosaic_0001>

<bundles_post_ra>
// kernel: upsampling_block.3
= control target key start
LH: loop header
LB: loop body
LE: loop exit
PB: predicated region body
PF: predicated region fallthrough
CT: control target
= control target key end

     0   :  { %s995_s15 = smov 0   ;;  %s997_s16 = smov 0   ;;  %s1122_s0 = inlined_call_operand.vmem [shape: bf16[2,8,16,16], index: 0, kind: input, shape index: {}]   ;;  %s1123_s1 = inlined_call_operand.vmem [shape: f32[8,2,1], index: 1, kind: input, shape index: {}]   ;;  %s1124_s2 = inlined_call_operand.vmem [shape: bf16[32,16], index: 2, kind: input, shape index: {}]   ;;  %s1125_s3 = inlined_call_operand.vmem [shape: bf16[16,32], index: 3, kind: input, shape index: {}]   ;;  %s1126_s4 = inlined_call_operand.vmem [shape: f32[2,32,256], index: 4, kind: output, shape index: {}]  }
   0x1   :  { %s999_s17 = smov 0  }
   0x2 LB: > { %s26_s18 = sadd.s32 1, %s960_s16  ;;  %p789_p0 = scmp.ge.s32.totalorder %s964_s17, 1  ;;  %s964_s17 = sphi %s999_s17, %s14_s17   ;;  %s960_s16 = sphi %s997_s16, %s1128_s16   ;;  %s956_s15 = sphi %s995_s15, %s1127_s15  }
   0x3   : > { %p28_p1 = scmp.ge.s32.totalorder %s26_s18, 2  ;;  %p195_p2 = scmp.lt.s32.totalorder %s964_s17, 3 }
   0x5   : > { %s1130_s18 = smov (%p28_p1, %s26_s18), 0  ;;  %p196_p3 = pnand %p789_p0, %p195_p2 }
   0x6   : > { %v295_v0 = vld [vmem:[%s1123_s1] sm:$0x3] (!%p196_p3)  ;;  %v296_v1 = vld [vmem:[%s1123_s1 + $0x2] sm:$0x3] (!%p196_p3)  ;;  %v297_v2 = vld [vmem:[%s1123_s1 + $0x4] sm:$0x3] (!%p196_p3) }
   0x7   : > { %199 = sbr.rel (%p196_p3) target bundleno = 654 (0x28e), region = 36  ;;  %879 = vpush (!%p196_p3), %v295_v0  ;;  %v298_v3 = vld [vmem:[%s1123_s1 + $0x6] sm:$0x3] (!%p196_p3)  ;;  %v299_v4 = vld [vmem:[%s1123_s1 + $0x8] sm:$0x3] (!%p196_p3)  ;;  %v351_v9 = vrot.slane (!%p196_p3), %v295_v0, 1 }
   0x8   : > { %881 = vpush (!%p196_p3), %v296_v1  ;;  %v300_v5 = vld [vmem:[%s1123_s1 + $0xa] sm:$0x3] (!%p196_p3)  ;;  %v301_v6 = vld [vmem:[%s1123_s1 + $0xc] sm:$0x3] (!%p196_p3)  ;;  %v939_v7 = vld [vmem:[%s1125_s3] sm:$0xff] (!%p196_p3)   ;;  %v352_v10 = vrot.slane (!%p196_p3), %v296_v1, 1 }
   0x9   : > { %883 = vpush (!%p196_p3), %v297_v2  ;;  %v302_v8 = vld [vmem:[%s1123_s1 + $0xe] sm:$0x3] (!%p196_p3)  ;;  %859 = vmatprep.subr.bf16.mxu0 (!%p196_p3), %v939_v7  ;;  %877 = vmatprep.subr.bf16.mxu1 (!%p196_p3), %v939_v7  ;;  %v353_v11 = vrot.slane (!%p196_p3), %v297_v2, 1  ;;  %v354_v12 = vrot.slane (!%p196_p3), %v298_v3, 1  ;;  %v355_v13 = vrot.slane (!%p196_p3), %v299_v4, 1  ;;  %v356_v14 = vrot.slane (!%p196_p3), %v300_v5, 1 }
   0xa   : > { %885 = vpush (!%p196_p3), %v298_v3  ;;  %860 = vmatpush3.bf16.msra.mxu0 (!%p196_p3), %v939_v7  ;;  %878 = vmatpush3.bf16.msra.mxu1 (!%p196_p3), %v939_v7  ;;  %v357_v15 = vrot.slane (!%p196_p3), %v301_v6, 1  ;;  %v358_v16 = vrot.slane (!%p196_p3), %v302_v8, 1  ;;  %p236_p4 = scmp.lt.s32.totalorder (!%p196_p3), %s956_s15, 1  ;;  %vm431_vm0 = vcmask (!%p196_p3), 130048   ;;  %s966_s9 = smov (!%p196_p3), 32   ;;  %vm579_vm1 = vcmask (!%p196_p3), 261120  }
   0xb   : > { %887 = vpush (!%p196_p3), %v299_v4  ;;  %s967_s10 = smov (!%p196_p3), 64   ;;  %s969_s12 = smov (!%p196_p3), 96   ;;  %vm583_vm2 = vcmask (!%p196_p3), 523264   ;;  %vm586_vm3 = vcmask (!%p196_p3), 785408  }
   0xc   : > { %889 = vpush (!%p196_p3), %v300_v5 }
   0xd   : > { %891 = vpush (!%p196_p3), %v301_v6 }
   0xe   : > { %893 = vpush %v302_v8  ;;  %s1132_s15 = smov (!%p236_p4, %s956_s15), 1 }
   0xf   : > { %895 = vpush %v351_v9  ;;  %s809_s11 = sshll.u32 %s1132_s15, 6 }
  0x10   : > { %897 = vpush %v352_v10  ;;  %s1052_s14 = scalar_lea.vmem %s1122_s0, %s809_s11 }
  0x11   : > { %899 = vpush %v353_v11  ;;  %v812_v17 = vld [vmem:[%s1052_s14] sm:$0xff]   ;;  %v843_v18 = vld [vmem:[%s1052_s14 + $0x8] sm:$0xff]   ;;  %v844_v19 = vld [vmem:[%s1052_s14 + $0x10] sm:$0xff]  }
  0x12   : > { %901 = vpush %v354_v12  ;;  %v813_v20 = vunpack.c.l.bf16 %v812_v17  ;;  %v814_v21 = vunpack.c.h.bf16 %v812_v17  ;;  %v817_v23 = vunpack.c.l.bf16 %v843_v18  ;;  %v818_v24 = vunpack.c.h.bf16 %v843_v18  ;;  %v845_v25 = vld [vmem:[%s1052_s14 + $0x18] sm:$0xff]   ;;  %v846_v29 = vld [vmem:[%s1052_s14 + $0x20] sm:$0xff]   ;;  %v1064_v31 = vld [vmem:[%s1052_s14 + $0x28] sm:$0xff]  }
  0x13   : > { %903 = vpush %v355_v13  ;;  %v821_v27 = vunpack.c.l.bf16 %v844_v19  ;;  %v822_v28 = vunpack.c.h.bf16 %v844_v19  ;;  %v825_v33 = vunpack.c.l.bf16 %v845_v25  ;;  %v826_v34 = vunpack.c.h.bf16 %v845_v25  ;;  %v848_v35 = vld [vmem:[%s1052_s14 + $0x30] sm:$0xff]   ;;  %v849_v40 = vld [vmem:[%s1052_s14 + $0x38] sm:$0xff]  }
  0x14   : > { %905 = vpush %v356_v14  ;;  %v829_v39 = vunpack.c.l.bf16 %v846_v29  ;;  %v830_v43 = vunpack.c.h.bf16 %v846_v29  ;;  %v833_v44 = vunpack.c.l.bf16 %v1064_v31  ;;  %v837_v46 = vunpack.c.l.bf16 %v848_v35 }
  0x15   : > { %907 = vpush %v357_v15  ;;  %v838_v47 = vunpack.c.h.bf16 %v848_v35  ;;  %v841_v50 = vunpack.c.l.bf16 %v849_v40  ;;  %v842_v58 = vunpack.c.h.bf16 %v849_v40  ;;  %v834_v10 = vunpack.c.h.bf16 %v1064_v31 }
  0x16   : > { %909 = vpush %v358_v16 }
  0x38   : > { %s880_s19 = spop %879 }
  0x39   : > { %s882_s20 = spop %881  ;;  %v305_v22 = vstv %s880_s19 }
  0x3a   : > { %s884_s21 = spop %883  ;;  %v309_v26 = vstv %s882_s20  ;;  %v335_v32 = vmul.f32 %v813_v20, %v305_v22  ;;  %v336_v36 = vmul.f32 %v814_v21, %v305_v22 }
  0x3b   : > { %s1058_s22 = spop %885  ;;  %v313_v30 = vstv %s884_s21  ;;  %v337_v37 = vmul.f32 %v817_v23, %v309_v26  ;;  %v338_v38 = vmul.f32 %v818_v24, %v309_v26 }
  0x3c   : > { %s1061_s23 = spop %887  ;;  %v339_v41 = vmul.f32 %v821_v27, %v313_v30  ;;  %v340_v42 = vmul.f32 %v822_v28, %v313_v30  ;;  %v317_v45 = vstv %s1058_s22 }
  0x3d   : > { %s1066_s24 = spop %889  ;;  %v341_v57 = vmul.f32 %v825_v33, %v317_v45  ;;  %v342_v61 = vmul.f32 %v826_v34, %v317_v45  ;;  %v321_v62 = vstv %s1061_s23  ;;  %s260_s23 = scalar_lea.vmem %s1126_s4, %s809_s11 }
  0x3e   : > { %s1069_s25 = spop %891  ;;  %v343_v9 = vmul.f32 %v829_v39, %v321_v62  ;;  %v344_v13 = vmul.f32 %v830_v43, %v321_v62  ;;  %v325_v14 = vstv %s1066_s24 }
  0x3f   : > { %s1072_s26 = spop %893  ;;  %v329_v49 = vstv %s1069_s25  ;;  %v345_v35 = vmul.f32 %v833_v44, %v325_v14 }
  0x40   : > { %s896_s27 = spop %895  ;;  %v347_v63 = vmul.f32 %v837_v46, %v329_v49  ;;  %v333_v0 = vstv %s1072_s26  ;;  %v348_v1 = vmul.f32 %v838_v47, %v329_v49 }
  0x41   : > { %v360_v48 = vstv %s896_s27  ;;  %s898_s28 = spop %897  ;;  %v349_v11 = vmul.f32 %v841_v50, %v333_v0  ;;  %v350_v12 = vmul.f32 %v842_v58, %v333_v0 }
  0x42   : > { %v383_v51 = vadd.f32 %v360_v48, %v335_v32  ;;  %v363_v52 = vstv %s898_s28  ;;  %s900_s29 = spop %899  ;;  %v384_v53 = vadd.f32 %v360_v48, %v336_v36  ;;  %v346_v36 = vmul.f32 %v834_v10, %v325_v14 }
  0x43   : > { %v385_v54 = vadd.f32 %v363_v52, %v337_v37  ;;  %v386_v55 = vadd.f32 %v363_v52, %v338_v38  ;;  %v366_v56 = vstv %s900_s29  ;;  %s1077_s30 = spop %901 }
  0x44   : > { %v387_v59 = vadd.f32 %v366_v56, %v339_v41  ;;  %v388_v60 = vadd.f32 %v366_v56, %v340_v42  ;;  %s1079_s5 = spop %903  ;;  %v399_v2 = vmax.f32 %v383_v51, 0.0  ;;  %v400_v5 = vmax.f32 %v384_v53, 0.0 }
  0x45   : > { %s1083_s6 = spop %905  ;;  %v401_v3 = vmax.f32 %v385_v54, 0.0  ;;  %v402_v4 = vmax.f32 %v386_v55, 0.0  ;;  %v369_v8 = vstv %s1077_s30  ;;  %v372_v15 = vstv %s1079_s5 }
  0x46   : > { %s908_s7 = spop %907  ;;  %v403_v6 = vmax.f32 %v387_v59, 0.0  ;;  %v404_v7 = vmax.f32 %v388_v60, 0.0  ;;  %v389_v18 = vadd.f32 %v369_v8, %v341_v57  ;;  %v390_v22 = vadd.f32 %v369_v8, %v342_v61 }
  0x47   : > { %s910_s8 = spop %909  ;;  %v378_v16 = vstv %s908_s7  ;;  %v416_v17 = vpack.c.bf16 %v402_v4, %v401_v3  ;;  %v415_v24 = vpack.c.bf16 %v400_v5, %v399_v2  ;;  %v391_v29 = vadd.f32 %v372_v15, %v343_v9 }
  0x48   : > { %v395_v19 = vadd.f32 %v378_v16, %v347_v63  ;;  %v396_v20 = vadd.f32 %v378_v16, %v348_v1  ;;  %v417_v21 = vpack.c.bf16 %v404_v7, %v403_v6  ;;  %v381_v23 = vstv %s910_s8 }
  0x49   : > { %v397_v27 = vadd.f32 %v381_v23, %v349_v11  ;;  %v398_v28 = vadd.f32 %v381_v23, %v350_v12  ;;  %v392_v30 = vadd.f32 %v372_v15, %v344_v13  ;;  %861 = vmatprep.mubr.msk.bf16.mxu0 %vm431_vm0, %v415_v24  ;;  %v405_v37 = vmax.f32 %v389_v18, 0.0  ;;  %v941_v23 = vld [vmem:[%s1124_s2 + $0x8] sm:$0xff]  }
  0x4a   : > { %v411_v25 = vmax.f32 %v395_v19, 0.0  ;;  %v412_v26 = vmax.f32 %v396_v20, 0.0  ;;  %862 = vmatmul.mubr.msk.bf16.vlgmr.msra.gmra.mrb[0].mxu0 %vm431_vm0, %v416_v17  ;;  %v406_v38 = vmax.f32 %v390_v22, 0.0  ;;  %v407_v40 = vmax.f32 %v391_v29, 0.0  ;;  %v940_v22 = vld [vmem:[%s1124_s2] sm:$0xff]  }
  0x4b   : > { %v413_v32 = vmax.f32 %v397_v27, 0.0  ;;  %v414_v33 = vmax.f32 %v398_v28, 0.0  ;;  %865 = vmatprep.mubr.msk.bf16.mxu0 %vm431_vm0, %v417_v21  ;;  %v408_v41 = vmax.f32 %v392_v30, 0.0  ;;  %v375_v42 = vstv %s1083_s6 }
  0x4c   : > { %v421_v34 = vpack.c.bf16 %v412_v26, %v411_v25  ;;  %v418_v43 = vpack.c.bf16 %v406_v38, %v405_v37  ;;  %v393_v45 = vadd.f32 %v375_v42, %v345_v35  ;;  %v394_v46 = vadd.f32 %v375_v42, %v346_v36 }
  0x4d   : > { %v422_v39 = vpack.c.bf16 %v414_v33, %v413_v32  ;;  %v419_v47 = vpack.c.bf16 %v408_v41, %v407_v40  ;;  %v968_v3 = vmov 0  }
  0x4e   : > { %873 = vmatprep.mubr.msk.bf16.mxu1 %vm431_vm0, %v421_v34  ;;  %v409_v31 = vmax.f32 %v393_v45, 0.0  ;;  %v410_v44 = vmax.f32 %v394_v46, 0.0 }
  0x4f   : > { %874 = vmatmul.mubr.msk.bf16.vlgmr.msra.gmra.mrb[0].mxu1 %vm431_vm0, %v422_v39 }
  0x50   : > { %v420_v48 = vpack.c.bf16 %v410_v44, %v409_v31  ;;  %650 = vmatprep.mubr.bf16.mxu1 %v968_v3 }
  0x52   : > { %866 = vmatmul.mubr.msk.bf16.gmra.mrb[4].mxu0 %vm431_vm0, %v418_v43 }
  0x53   : > { %869 = vmatprep.mubr.msk.bf16.mxu0 %vm431_vm0, %v419_v47 }
  0x5a   : > { %870 = vmatmul.mubr.msk.bf16.gmra.mrb[8].mxu0 %vm431_vm0, %v420_v48 }
 0x11d   : > { %v863_v49 = vpop.f32.mrb[0].mxu0 }
 0x11e   : > { %v490_v50 = vpop.f32.mrb[1].mxu0 }
 0x11f   : > { %v864_v51 = vpop.f32.mrb[2].mxu0 }
 0x120   : > { %v554_v52 = vpack.c.bf16 %v864_v51, %v863_v49  ;;  %v493_v53 = vpop.f32.mrb[3].mxu0 }
 0x121   : > { %v553_v55 = vpack.c.bf16 %v493_v53, %v490_v50 }
 0x122   : > { %v875_v54 = vpop.f32.mrb[0].mxu1  ;;  %562 = vrot.lane.b32.xlu0 %v554_v52, %s966_s9 }
 0x123   : > { %v538_v56 = vpop.f32.mrb[1].mxu1 }
 0x124   : > { %v876_v57 = vpop.f32.mrb[2].mxu1 }
 0x125   : > { %v560_v58 = vpack.c.bf16 %v876_v57, %v875_v54  ;;  %v541_v59 = vpop.f32.mrb[3].mxu1  ;;  %v867_v61 = vpop.f32.mrb[4].mxu0 }
 0x126   : > { %v559_v60 = vpack.c.bf16 %v541_v59, %v538_v56  ;;  %v506_v62 = vpop.f32.mrb[5].mxu0 }
 0x127   : > { %v868_v63 = vpop.f32.mrb[6].mxu0 }
 0x128   : > { %574 = vrot.lane.b32.xlu1 %v559_v60, %s967_s10  ;;  %v556_v0 = vpack.c.bf16 %v868_v63, %v867_v61  ;;  %v509_v1 = vpop.f32.mrb[7].mxu0 }
 0x129   : > { %v555_v2 = vpack.c.bf16 %v509_v1, %v506_v62 }
 0x12c   : > { %565 = vrot.lane.b32.xlu1 %v555_v2, %s967_s10 }
 0x12d   : > { %v871_v4 = vpop.f32.mrb[8].mxu0 }
 0x12e   : > { %v522_v5 = vpop.f32.mrb[9].mxu0 }
 0x12f   : > { %v872_v6 = vpop.f32.mrb[10].mxu0 }
 0x130   : > { %568 = vrot.lane.b32.xlu1 %v556_v0, %s969_s12  ;;  %v558_v7 = vpack.c.bf16 %v872_v6, %v871_v4  ;;  %v525_v8 = vpop.f32.mrb[11].mxu0 }
 0x131   : > { %v557_v9 = vpack.c.bf16 %v525_v8, %v522_v5 }
 0x132   : > { %571 = vrot.lane.b32.xlu0 %v558_v7, %s966_s9 }
 0x136   : > { %577 = vrot.lane.b32.xlu0 %v560_v58, %s969_s12 }
 0x194   : > { %v563_v11 = vpop.permute.xlu0 %562 }
 0x195   : > { %v582_v16 = vsel %vm579_vm1, %v553_v55, %v563_v11 }
 0x19a   : > { %v575_v10 = vpop.permute.xlu1 %574 }
 0x19e   : > { %v566_v12 = vpop.permute.xlu1 %565 }
 0x19f   : > { %v585_v19 = vsel %vm583_vm2, %v582_v16, %v566_v12 }
 0x1a2   : > { %v569_v15 = vpop.permute.xlu1 %568 }
 0x1a3   : > { %v588_v21 = vsel %vm586_vm3, %v585_v19, %v569_v15 }
 0x1a4   : > { %v572_v13 = vpop.permute.xlu0 %571 }
 0x1a5   : > { %v592_v14 = vsel %vm579_vm1, %v557_v9, %v572_v13 }
 0x1a6   : > { %v594_v18 = vsel %vm583_vm2, %v592_v14, %v575_v10 }
 0x1a8   : > { %v578_v17 = vpop.permute.xlu0 %577 }
 0x1a9   : > { %v596_v20 = vsel %vm586_vm3, %v594_v18, %v578_v17 }
 0x1aa   : > { %618 = vmatprep.subr.bf16.mxu1 %v596_v20 }
 0x1ab   : > { %619 = vmatpush1.bf16.msra.mxu1 %v588_v21 }
 0x1ae   : > { %805 = vmatmul.mubr.msk.bf16.vlgmr.msra.gmra.mrb[4].mxu1 %vm431_vm0, %v940_v22 }
 0x1af   : > { %660 = vmatprep.mubr.bf16.mxu1 %v968_v3 }
 0x1b6   : > { %806 = vmatmul.mubr.msk.bf16.gmra.mrb[8].mxu1 %vm431_vm0, %v941_v23 }
 0x281   : > { %v652_v24 = vpop.f32.mrb[4].mxu1 }
 0x282   : > { %671 = vst [vmem:[%s260_s23] sm:$0xff] %v652_v24  ;;  %v654_v25 = vpop.f32.mrb[5].mxu1 }
 0x283   : > { %672 = vst [vmem:[%s260_s23 + $0x8] sm:$0xff] %v654_v25  ;;  %v656_v26 = vpop.f32.mrb[6].mxu1 }
 0x284   : > { %673 = vst [vmem:[%s260_s23 + $0x10] sm:$0xff] %v656_v26  ;;  %v658_v27 = vpop.f32.mrb[7].mxu1 }
 0x285   : > { %674 = vst [vmem:[%s260_s23 + $0x18] sm:$0xff] %v658_v27 }
 0x289   : > { %v662_v28 = vpop.f32.mrb[8].mxu1 }
 0x28a   : > { %675 = vst [vmem:[%s260_s23 + $0x20] sm:$0xff] %v662_v28  ;;  %v664_v29 = vpop.f32.mrb[9].mxu1 }
 0x28b   : > { %676 = vst [vmem:[%s260_s23 + $0x28] sm:$0xff] %v664_v29  ;;  %v666_v30 = vpop.f32.mrb[10].mxu1 }
 0x28c   : > { %677 = vst [vmem:[%s260_s23 + $0x30] sm:$0xff] %v666_v30  ;;  %v668_v32 = vpop.f32.mrb[11].mxu1 }
 0x28d   : > { %678 = vst [vmem:[%s260_s23 + $0x38] sm:$0xff] %v668_v32 }
 0x28e PF: > { %s14_s17 = sadd.s32 1, %s964_s17   ;;  %s1127_s15 = smov %s960_s16 }
 0x28f   : > { %p11_p5 = scmp.ge.s32.totalorder %s14_s17, 4   ;;  %s1128_s16 = smov %s1130_s18 }
 0x291   :  { %13 = sbr.rel (!%p11_p5) target bundleno = 2 (0x2), region = 69 }

// kernel: upsampling_block.2
= control target key start
LH: loop header
LB: loop body
LE: loop exit
PB: predicated region body
PF: predicated region fallthrough
CT: control target
= control target key end

     0   :  { %s1379_s15 = smov 0   ;;  %s1540_s0 = inlined_call_operand.vmem [shape: f32[2,4,256], index: 0, kind: input, shape index: {}]   ;;  %s1541_s1 = inlined_call_operand.vmem [shape: bf16[9,8,4], index: 1, kind: input, shape index: {}]   ;;  %s1542_s2 = inlined_call_operand.vmem [shape: bf16[9,1,256], index: 2, kind: input, shape index: {}]   ;;  %s1543_s3 = inlined_call_operand.vmem [shape: bf16[2,8,256], index: 3, kind: output, shape index: {0}]   ;;  %s1544_s4 = inlined_call_operand.vmem [shape: f32[2,8,2], index: 4, kind: output, shape index: {1}]  }
   0x1 LB: > { %s1230_s16 = sadd.s32 4294967295, %s1342_s15   ;;  %p1234_p0 = scmp.ge.s32.totalorder %s1342_s15, 1  ;;  %s1342_s15 = sphi %s1379_s15, %s15_s15  }
   0x2   : > { %p165_p1 = scmp.lt.s32.totalorder %s1342_s15, 3 }
   0x4   : > { %p166_p2 = pnand %p1234_p0, %p165_p1 }
   0x5   : > { %p195_p3 = scmp.lt.s32.totalorder (!%p166_p2), %s1230_s16, 1  ;;  %v1344_v0 = vmov (!%p166_p2), 0   ;;  %vm330_vm0 = vcmask (!%p166_p2), 1041408   ;;  %s1345_s21 = smov (!%p166_p2), 127   ;;  %vm326_vm1 = vcmask (!%p166_p2), 31744   ;;  %v243_v9 = vlaneseq (!%p166_p2) }
   0x6   : > { %169 = sbr.rel (%p166_p2) target bundleno = 545 (0x221), region = 32  ;;  %685 = vmatprep.mubr.bf16.mxu0 (!%p166_p2), %v1344_v0  ;;  %369 = vmatprep.mubr.bf16.mxu1 (!%p166_p2), %v1344_v0  ;;  %s1346_s22 = smov (!%p166_p2), 16   ;;  %v1258_v6 = vld [vmem:[%s1541_s1 + $0x10] sm:$0xf] (!%p166_p2)  ;;  %v1353_v7 = vmov (!%p166_p2), 1966171168  }
   0x7   : > { %s1347_s25 = smov (!%p166_p2), 17   ;;  %s1348_s26 = smov (!%p166_p2), 113   ;;  %v241_v8 = vunpack.c.l.s4 (!%p166_p2), %v1353_v7  ;;  %v244_v11 = vshrl.u32 (!%p166_p2), %v243_v9, 7  ;;  %vm700_vm2 = vcmask (!%p166_p2), 1039360   ;;  %vm275_vm3 = vcmask (!%p166_p2), 130048  }
   0x8   : > { %s1349_s27 = smov (!%p166_p2), 15   ;;  %s1350_s28 = smov (!%p166_p2), 112   ;;  %v1262_v12 = vld.sshfl [vmem:[%s1542_s2 + $0xa] sm:$0x11 pattern:$0x75316420] (!%p166_p2) }
   0x9   : > { %s1351_s29 = smov (!%p166_p2), 1   ;;  %s1352_s30 = smov (!%p166_p2), 111   ;;  %v242_v10 = vunpack.c.0.s8 (!%p166_p2), %v241_v8  ;;  %v1242_v13 = vld.sshfl [vmem:[%s1542_s2 + $0x2] sm:$0x11 pattern:$0x75316420] (!%p166_p2)  ;;  %v718_v15 = vcombine.high (!%p166_p2), %v1262_v12, %v1262_v12 }
   0xa   : > { %v1240_v16 = vld.sshfl [vmem:[%s1542_s2] sm:$0x11 pattern:$0x75316420] (!%p166_p2)  ;;  %v293_v17 = vcombine.high (!%p166_p2), %v1242_v13, %v1242_v13  ;;  %v1422_v26 = vsub.s32 (!%p166_p2), 0, %v244_v11  ;;  %vm222_vm4 = vcmask (!%p166_p2), 138240  }
   0xb   : > { %v1408_v14 = vsub.s32 (!%p166_p2), %v242_v10, %v244_v11  ;;  %v239_v18 = vcombine.high (!%p166_p2), %v1240_v16, %v1240_v16  ;;  %v1267_v23 = vld.sshfl [vmem:[%s1542_s2 + $0xc] sm:$0x11 pattern:$0x75316420] (!%p166_p2)  ;;  %vm807_vm5 = vcmask (!%p166_p2), 924672   ;;  %vm432_vm6 = vcmask (!%p166_p2), 121856  }
   0xc   : > { %v825_v29 = vcombine.high (!%p166_p2), %v1267_v23, %v1267_v23  ;;  %v1249_v35 = vld.sshfl [vmem:[%s1542_s2 + $0x4] sm:$0x11 pattern:$0x75316420] (!%p166_p2)  ;;  %vm914_vm7 = vcmask (!%p166_p2), 916480   ;;  %vm539_vm8 = vcmask (!%p166_p2), 7168  }
   0xd   : > { %s1546_s16 = smov (!%p195_p3, %s1230_s16), 1  ;;  %v725_v19 = vrot.slane %v1262_v12, %v1408_v14  ;;  %v732_v20 = vrot.slane %v718_v15, %v1408_v14  ;;  %v307_v21 = vrot.slane %v293_v17, %v1408_v14  ;;  %v300_v22 = vrot.slane %v1242_v13, %v1408_v14  ;;  %v1272_v41 = vld.sshfl [vmem:[%s1542_s2 + $0xe] sm:$0x11 pattern:$0x75316420] }
   0xe   : > { %s1389_s17 = sshll.u32 %s1546_s16, 3  ;;  %v246_v24 = vrot.slane %v1240_v16, %v1408_v14  ;;  %v253_v25 = vrot.slane %v239_v18, %v1408_v14  ;;  %v832_v39 = vrot.slane %v1267_v23, %v1408_v14  ;;  %v839_v40 = vrot.slane %v825_v29, %v1408_v14  ;;  %v1243_v10 = vld [vmem:[%s1541_s1 + $0x4] sm:$0xf] }
   0xf   : > { %s199_s20 = scalar_lea.vmem %s1540_s0, %s1389_s17  ;;  %v734_v27 = vpack.i.b16 %v725_v19, %v725_v19  ;;  %v741_v28 = vpack.i.b16 %v732_v20, %v732_v20  ;;  %v316_v31 = vpack.i.b16 %v307_v21, %v307_v21  ;;  %v309_v32 = vpack.i.b16 %v300_v22, %v300_v22  ;;  %v1277_v19 = vld.sshfl [vmem:[%s1542_s2 + $0x10] sm:$0x11 pattern:$0x75316420]  ;;  %s204_s16 = scalar_lea.vmem %s1543_s3, %s1389_s17 }
  0x10   : > { %v210_v1 = vld [vmem:[%s199_s20] sm:$0xff]  ;;  %v255_v33 = vpack.i.b16 %v246_v24, %v246_v24  ;;  %v262_v34 = vpack.i.b16 %v253_v25, %v253_v25  ;;  %v450_v45 = vcombine.high %v1249_v35, %v1249_v35  ;;  %v457_v53 = vrot.slane %v1249_v35, %v1408_v14  ;;  %s208_s20 = scalar_lea.vmem %s1544_s4, %s1389_s17 }
  0x11   : > { %v214_v2 = vpack.c.bf16 %v210_v1, %v210_v1  ;;  %v212_v3 = vcombine.high %v210_v1, %v210_v1  ;;  %v739_v37 = vrot.slane %v734_v27, %v1422_v26  ;;  %v746_v38 = vrot.slane %v741_v28, %v1422_v26  ;;  %v1254_v1 = vld.sshfl [vmem:[%s1542_s2 + $0x6] sm:$0x11 pattern:$0x75316420] }
  0x12   : > { %v321_v43 = vrot.slane %v316_v31, %v1422_v26  ;;  %v314_v44 = vrot.slane %v309_v32, %v1422_v26  ;;  %v260_v48 = vrot.slane %v255_v33, %v1422_v26  ;;  %v267_v49 = vrot.slane %v262_v34, %v1422_v26 }
  0x13   : > { %696 = vrot.lane.b32.xlu1 %v214_v2, %s1345_s21  ;;  %v215_v4 = vpack.c.bf16 %v212_v3, %v212_v3  ;;  %v648_v5 = vsel %vm330_vm0, %v214_v2, 0  ;;  %v932_v54 = vcombine.high %v1272_v41, %v1272_v41  ;;  %v841_v57 = vpack.i.b16 %v832_v39, %v832_v39 }
  0x14   : > { %v848_v58 = vpack.i.b16 %v839_v40, %v839_v40  ;;  %v464_v63 = vrot.slane %v450_v45, %v1408_v14  ;;  %v557_v12 = vcombine.high %v1254_v1, %v1254_v1  ;;  %v1039_v33 = vcombine.high %v1277_v19, %v1277_v19 }
  0x15   : > { %271 = vrot.lane.b32.xlu0 %v215_v4, %s1346_s22  ;;  %1259 = vmatprep.subr.msk.bf16.mxu0 %vm330_vm0, %v215_v4  ;;  %v946_v7 = vrot.slane %v932_v54, %v1408_v14  ;;  %v846_v11 = vrot.slane %v841_v57, %v1422_v26  ;;  %vm1021_vm9 = vcmask 908288   ;;  %vm1133_vm10 = vcmask 15368  }
  0x16   : > { %654 = vmatpush1.bf16.msra.mxu0 %v648_v5  ;;  %v466_v5 = vpack.i.b16 %v457_v53, %v457_v53  ;;  %v853_v17 = vrot.slane %v848_v58, %v1422_v26  ;;  %v473_v18 = vpack.i.b16 %v464_v63, %v464_v63  ;;  %v571_v28 = vrot.slane %v557_v12, %v1408_v14 }
  0x17   : > { %698 = vrot.lane.b32.xlu1 %v215_v4, %s1345_s21  ;;  %v955_v24 = vpack.i.b16 %v946_v7, %v946_v7 }
  0x18   : > { %v471_v22 = vrot.slane %v466_v5, %v1422_v26  ;;  %v478_v32 = vrot.slane %v473_v18, %v1422_v26  ;;  %v580_v40 = vpack.i.b16 %v571_v28, %v571_v28 }
  0x19   : > { %273 = vrot.lane.b32.xlu0 %v214_v2, %s1346_s22  ;;  %1260 = vmatmul.mubr.msk.bf16.vlgmr.msra.gmra.mrb[0].mxu0 %vm326_vm1, %v1258_v6  ;;  %v939_v6 = vrot.slane %v1272_v41, %v1408_v14  ;;  %v1046_v41 = vrot.slane %v1277_v19, %v1408_v14  ;;  %v960_v45 = vrot.slane %v955_v24, %v1422_v26 }
  0x1a   : > { %792 = vmatprep.mubr.bf16.mxu0 %v1344_v0  ;;  %v585_v53 = vrot.slane %v580_v40, %v1422_v26 }
  0x1b   : > { %220 = vrot.lane.b32.xlu1 %v214_v2, %s1347_s25  ;;  %v948_v23 = vpack.i.b16 %v939_v6, %v939_v6 }
  0x1d   : > { %217 = vrot.lane.b32.xlu0 %v215_v4, %s1347_s25 }
  0x1f   : > { %805 = vrot.lane.b32.xlu1 %v215_v4, %s1348_s26 }
  0x21   : > { %803 = vrot.lane.b32.xlu0 %v214_v2, %s1348_s26 }
  0x23   : > { %430 = vrot.lane.b32.xlu1 %v214_v2, %s1349_s27 }
  0x25   : > { %428 = vrot.lane.b32.xlu0 %v215_v4, %s1349_s27 }
  0x27   : > { %912 = vrot.lane.b32.xlu1 %v215_v4, %s1350_s28 }
  0x29   : > { %910 = vrot.lane.b32.xlu0 %v214_v2, %s1350_s28 }
  0x2b   : > { %537 = vrot.lane.b32.xlu1 %v214_v2, %s1351_s29 }
  0x2d   : > { %535 = vrot.lane.b32.xlu0 %v215_v4, %s1351_s29 }
  0x2f   : > { %1019 = vrot.lane.b32.xlu1 %v215_v4, %s1352_s30 }
  0x31   : > { %1017 = vrot.lane.b32.xlu0 %v214_v2, %s1352_s30  ;;  %v1263_v2 = vld [vmem:[%s1541_s1 + $0x14] sm:$0xf] }
  0x85   : > { %v697_v30 = vpop.permute.xlu1 %696 }
  0x87   : > { %v272_v36 = vpop.permute.xlu0 %271 }
  0x89   : > { %v699_v42 = vpop.permute.xlu1 %698 }
  0x8a   : > { %v701_v46 = vsel %vm700_vm2, %v697_v30, %v699_v42  ;;  %v706_v47 = vsel %vm700_vm2, %v699_v42, %v697_v30 }
  0x8b   : > { %v747_v50 = vmul.bf16 %v739_v37, %v701_v46  ;;  %v748_v51 = vmul.bf16 %v746_v38, %v706_v47  ;;  %v274_v52 = vpop.permute.xlu0 %273  ;;  %v564_v37 = vrot.slane %v1254_v1, %v1408_v14  ;;  %v1053_v46 = vrot.slane %v1039_v33, %v1408_v14  ;;  %v1268_v47 = vld [vmem:[%s1541_s1 + $0x18] sm:$0xf] }
  0x8c   : > { %v276_v55 = vsel %vm275_vm3, %v274_v52, %v272_v36  ;;  %v281_v56 = vsel %vm275_vm3, %v272_v36, %v274_v52  ;;  %v953_v36 = vrot.slane %v948_v23, %v1422_v26  ;;  %v1055_v14 = vpack.i.b16 %v1046_v41, %v1046_v41 }
  0x8d   : > { %1264 = vmatprep.subr.msk.bf16.mxu0 %vm330_vm0, %v748_v51  ;;  %v755_v59 = vsel %vm330_vm0, %v747_v50, 0  ;;  %v323_v60 = vmul.bf16 %v321_v43, %v276_v55  ;;  %v322_v61 = vmul.bf16 %v314_v44, %v281_v56  ;;  %v221_v62 = vpop.permute.xlu1 %220  ;;  %v270_v50 = vld [vmem:[%s1541_s1] sm:$0xf]  ;;  %v1062_v58 = vpack.i.b16 %v1053_v46, %v1053_v46 }
  0x8e   : > { %761 = vmatpush1.bf16.msra.mxu0 %v755_v59 }
  0x8f   : > { %1244 = vmatprep.subr.msk.bf16.mxu1 %vm330_vm0, %v323_v60  ;;  %v332_v3 = vsel %vm330_vm0, %v322_v61, 0  ;;  %v218_v4 = vpop.permute.xlu0 %217 }
  0x90   : > { %338 = vmatpush1.bf16.msra.mxu1 %v332_v3  ;;  %v223_v8 = vsel %vm222_vm4, %v221_v62, %v218_v4  ;;  %v228_v9 = vsel %vm222_vm4, %v218_v4, %v221_v62  ;;  %v1067_v3 = vrot.slane %v1062_v58, %v1422_v26 }
  0x91   : > { %v268_v13 = vmul.bf16 %v260_v48, %v228_v9  ;;  %v269_v15 = vmul.bf16 %v267_v49, %v223_v8  ;;  %1265 = vmatmul.mubr.msk.bf16.vlgmr.msra.gmra.mrb[0].mxu0 %vm326_vm1, %v1263_v2  ;;  %v806_v16 = vpop.permute.xlu1 %805  ;;  %v573_v49 = vpack.i.b16 %v564_v37, %v564_v37  ;;  %v1060_v2 = vrot.slane %v1055_v14, %v1422_v26 }
  0x92   : > { %899 = vmatprep.mubr.bf16.mxu0 %v1344_v0 }
  0x93   : > { %1245 = vmatmul.mubr.msk.bf16.vlgmr.msra.gmra.mrb[0].mxu1 %vm326_vm1, %v1243_v10  ;;  %1246 = vmatprep.subr.msk.bf16.mxu1 %vm330_vm0, %v269_v15  ;;  %v804_v20 = vpop.permute.xlu0 %803  ;;  %v382_v21 = vsel %vm330_vm0, %v268_v13, 0  ;;  %v578_v61 = vrot.slane %v573_v49, %v1422_v26  ;;  %v1250_v26 = vld [vmem:[%s1541_s1 + $0x8] sm:$0xf]  ;;  %v1278_v15 = vld [vmem:[%s1541_s1 + $0x20] sm:$0xf] }
  0x94   : > { %v808_v25 = vsel %vm807_vm5, %v804_v20, %v806_v16  ;;  %v813_v27 = vsel %vm807_vm5, %v806_v16, %v804_v20  ;;  %388 = vmatpush1.bf16.msra.mxu1 %v382_v21  ;;  %419 = vmatprep.mubr.bf16.mxu1 %v1344_v0  ;;  %v1255_v16 = vld [vmem:[%s1541_s1 + $0xc] sm:$0xf] }
  0x95   : > { %v854_v29 = vmul.bf16 %v846_v11, %v808_v25  ;;  %v855_v30 = vmul.bf16 %v853_v17, %v813_v27  ;;  %v431_v31 = vpop.permute.xlu1 %430  ;;  %v1273_v11 = vld [vmem:[%s1541_s1 + $0x1c] sm:$0xf] }
  0x97   : > { %1269 = vmatprep.subr.msk.bf16.mxu0 %vm330_vm0, %v855_v30  ;;  %v862_v34 = vsel %vm330_vm0, %v854_v29, 0  ;;  %v429_v35 = vpop.permute.xlu0 %428 }
  0x98   : > { %868 = vmatpush1.bf16.msra.mxu0 %v862_v34  ;;  %v433_v38 = vsel %vm432_vm6, %v431_v31, %v429_v35  ;;  %v438_v39 = vsel %vm432_vm6, %v429_v35, %v431_v31 }
  0x99   : > { %v479_v42 = vmul.bf16 %v471_v22, %v438_v39  ;;  %v480_v43 = vmul.bf16 %v478_v32, %v433_v38  ;;  %v913_v44 = vpop.permute.xlu1 %912 }
  0x9b   : > { %1251 = vmatprep.subr.msk.bf16.mxu1 %vm330_vm0, %v480_v43  ;;  %v911_v48 = vpop.permute.xlu0 %910  ;;  %v487_v56 = vsel %vm330_vm0, %v479_v42, 0 }
  0x9c   : > { %v915_v51 = vsel %vm914_vm7, %v911_v48, %v913_v44  ;;  %v920_v52 = vsel %vm914_vm7, %v913_v44, %v911_v48 }
  0x9d   : > { %1270 = vmatmul.mubr.msk.bf16.vlgmr.msra.gmra.mrb[0].mxu0 %vm326_vm1, %v1268_v47  ;;  %v961_v54 = vmul.bf16 %v953_v36, %v915_v51  ;;  %v962_v55 = vmul.bf16 %v960_v45, %v920_v52  ;;  %v538_v57 = vpop.permute.xlu1 %537 }
  0x9e   : > { %1006 = vmatprep.mubr.bf16.mxu0 %v1344_v0 }
  0x9f   : > { %1247 = vmatmul.mubr.msk.bf16.vlgmr.msra.gmra.mrb[0].mxu1 %vm326_vm1, %v270_v50  ;;  %1274 = vmatprep.subr.msk.bf16.mxu0 %vm330_vm0, %v962_v55  ;;  %v969_v59 = vsel %vm330_vm0, %v961_v54, 0  ;;  %v536_v60 = vpop.permute.xlu0 %535 }
  0xa0   : > { %493 = vmatpush1.bf16.msra.mxu1 %v487_v56  ;;  %975 = vmatpush1.bf16.msra.mxu0 %v969_v59  ;;  %v540_v62 = vsel %vm539_vm8, %v538_v57, %v536_v60  ;;  %v545_v4 = vsel %vm539_vm8, %v536_v60, %v538_v57 }
  0xa1   : > { %v587_v63 = vmul.bf16 %v585_v53, %v540_v62  ;;  %524 = vmatprep.mubr.bf16.mxu1 %v1344_v0  ;;  %v1020_v1 = vpop.permute.xlu1 %1019  ;;  %v586_v8 = vmul.bf16 %v578_v61, %v545_v4 }
  0xa3   : > { %1256 = vmatprep.subr.msk.bf16.mxu1 %vm330_vm0, %v587_v63  ;;  %v1018_v5 = vpop.permute.xlu0 %1017  ;;  %v594_v13 = vsel %vm330_vm0, %v586_v8, 0 }
  0xa4   : > { %v1022_v6 = vsel %vm1021_vm9, %v1018_v5, %v1020_v1  ;;  %v1027_v7 = vsel %vm1021_vm9, %v1020_v1, %v1018_v5 }
  0xa5   : > { %v1068_v9 = vmul.bf16 %v1060_v2, %v1022_v6  ;;  %v1069_v10 = vmul.bf16 %v1067_v3, %v1027_v7 }
  0xa7   : > { %1279 = vmatprep.subr.msk.bf16.mxu0 %vm330_vm0, %v1069_v10  ;;  %v1076_v12 = vsel %vm330_vm0, %v1068_v9, 0 }
  0xa9   : > { %1275 = vmatmul.mubr.msk.bf16.vlgmr.msra.gmra.mrb[0].mxu0 %vm326_vm1, %v1273_v11 }
  0xaa   : > { %1082 = vmatpush1.bf16.msra.mxu0 %v1076_v12  ;;  %1113 = vmatprep.mubr.bf16.mxu0 %v1344_v0 }
  0xab   : > { %1252 = vmatmul.mubr.msk.bf16.vlgmr.msra.gmra.mrb[0].mxu1 %vm326_vm1, %v1250_v26 }
  0xac   : > { %600 = vmatpush1.bf16.msra.mxu1 %v594_v13  ;;  %631 = vmatprep.mubr.bf16.mxu1 %v1344_v0 }
  0xb5   : > { %1280 = vmatmul.mubr.msk.bf16.vlgmr.msra.gmra.mrb[0].mxu0 %vm326_vm1, %v1278_v15 }
  0xb7   : > { %1257 = vmatmul.mubr.msk.bf16.vlgmr.msra.gmra.mrb[0].mxu1 %vm326_vm1, %v1255_v16 }
 0x188   : > { %v1115_v17 = vpop.f32.mrb[0].mxu0 }
 0x189   : > { %v1117_v18 = vpop.f32.mrb[1].mxu0 }
 0x18a   : > { %v633_v19 = vpop.f32.mrb[0].mxu1  ;;  %v1119_v20 = vpop.f32.mrb[2].mxu0 }
 0x18b   : > { %v1287_v21 = vadd.f32 %v1115_v17, %v633_v19  ;;  %v635_v22 = vpop.f32.mrb[1].mxu1  ;;  %v1120_v0 = vpop.f32.mrb[3].mxu0 }
 0x18c   : > { %v1288_v23 = vadd.f32 %v1117_v18, %v635_v22  ;;  %v637_v24 = vpop.f32.mrb[2].mxu1 }
 0x18d   : > { %v638_v25 = vpop.f32.mrb[3].mxu1  ;;  %v1128_v27 = vmul.f32 %v1287_v21, %v1287_v21 }
 0x18e   : > { %v1286_v28 = vpack.c.bf16 %v1288_v23, %v1287_v21  ;;  %v1124_v29 = vadd.f32 %v1288_v23, %v1287_v21  ;;  %v1129_v30 = vmul.f32 %v1288_v23, %v1288_v23 }
 0x190   : > { %1143 = vst [vmem:[%s204_s16] sm:$0xff] %v1286_v28  ;;  %1125 = vadd.xlane.f32.xlu0 %v1124_v29  ;;  %v1130_v31 = vadd.f32 %v1129_v30, %v1128_v27 }
 0x192   : > { %1131 = vadd.xlane.f32.xlu1 %v1130_v31 }
 0x21d   : > { %v1126_v32 = vpop.xlane.xlu0 %1125 }
 0x21e   : > { %1127 = vst.msk [vmem:[%s208_s20] sm:$0xff] %vm539_vm8, %v1126_v32 }
 0x21f   : > { %v1132_v33 = vpop.xlane.xlu1 %1131 }
 0x220   : > { %1134 = vst.msk [vmem:[%s208_s20] sm:$0xff] %vm1133_vm10, %v1132_v33 }
 0x221 PF: > { %s15_s15 = sadd.s32 1, %s1342_s15  }
 0x222   : > { %p12_p4 = scmp.ge.s32.totalorder %s15_s15, 4  }
 0x224   :  { %14 = sbr.rel (!%p12_p4) target bundleno = 1 (0x1), region = 89 }

</bundles_post_ra>
